<compile_context>
chip_gen: v6e
topology: v6e:2x2x1
jax: 0.10.0
libtpu: 0.0.40
codegen_flags: <defaults>
</compile_context>

<pallas_src>
import functools
import math

import numpy as np
import jax
import jax.numpy as jnp
from jax.experimental import pallas as pl
from jax.experimental.pallas import tpu as pltpu

# ----------------------------- module defaults ------------------------------
SCALE_LIST = [2, 4, 2]
DIMS = [96, 96, 192]
KERNEL_SIZE = [5, 3, 3]
DEPTHS = [2, 4, 6]
NUM_HEADS = [8, 8, 8]
WINDOW_SIZE = [8, 8, 8]
MLP_RATIO = 2.0
HYPER_DIM = [192, 96, 192]
INPUT_DIM = 3
SCALES_MIN = 0.11          # GaussianConditional scale lower bound
LIKELIHOOD_BOUND = 1e-9

_ATTN_WB = 16              # windows per attention grid step
_INV_SQRT2 = 0.7071067811865476


def _round_up(x, m):
    return (x + m - 1) // m * m


def _erf_approx(x):
    # Abramowitz & Stegun 7.1.26 (|err| < 1.5e-7); only VPU/EUP ops, so it is
    # safe both inside Pallas kernels (GELU / Gaussian CDF) and in JAX glue.
    a1, a2, a3, a4, a5 = (0.254829592, -0.284496736, 1.421413741,
                          -1.453152027, 1.061405429)
    p = 0.3275911
    sgn = jnp.where(x < 0.0, -1.0, 1.0)
    ax = jnp.abs(x)
    t = 1.0 / (1.0 + p * ax)
    poly = ((((a5 * t + a4) * t + a3) * t + a2) * t + a1) * t
    return sgn * (1.0 - poly * jnp.exp(-ax * ax))


# ============================ Pallas kernel: matmul ==========================
def _matmul_kernel(a_ref, b_ref, bias_ref, o_ref, *, activation):
    acc = jnp.dot(a_ref[...], b_ref[...], preferred_element_type=jnp.float32)
    acc = acc + bias_ref[...]
    if activation == "gelu":           # exact-erf GELU via A&S approximation
        acc = 0.5 * acc * (1.0 + _erf_approx(acc * _INV_SQRT2))
    elif activation == "relu":
        acc = jnp.maximum(acc, 0.0)
    o_ref[...] = acc.astype(o_ref.dtype)


def pallas_matmul(a, b, bias, *, n_out=None, activation=None,
                  out_dtype=jnp.float32, tm=512, tn=256):
    """out = act(a @ b + bias).  bf16 MXU feed, f32 accumulation, single-K
    block (every K in this model is <= ~2.4k so the whole strip fits VMEM).
    `b`/`bias` may be pre-padded (bf16) weights produced at param-build time;
    `n_out` is the logical output width."""
    M, K = a.shape
    Kb, Nb = b.shape
    assert Kb >= K
    N = Nb if n_out is None else n_out
    Np = _round_up(Nb, 128)
    if Np != Nb:
        b = jnp.pad(b, ((0, 0), (0, Np - Nb)))
    b = b.astype(jnp.bfloat16)
    if bias is None:
        bias = jnp.zeros((1, Np), jnp.float32)
    else:
        bias = bias.reshape(1, -1).astype(jnp.float32)
        if bias.shape[1] != Np:
            bias = jnp.pad(bias, ((0, 0), (0, Np - bias.shape[1])))

    # tn=256 keeps the 256-wide MXUs (v6e/v7x) full where N allows.
    tn_eff = 256 if (tn >= 256 and Np % 256 == 0) else 128
    Mp8 = _round_up(M, 8)
    tm_base = 1024 if Mp8 >= 4096 else tm       # big-M calls: bigger DMA tiles
    tm_eff = min(tm_base, Mp8)
    if Mp8 <= tm_eff and Np <= tn_eff and Mp8 >= 16:
        # keep >= 2 grid steps so both v7x TensorCores get work
        tm_eff = _round_up(pl.cdiv(Mp8, 2), 8)
    Mp = _round_up(M, tm_eff)

    a_p = jnp.pad(a.astype(jnp.bfloat16), ((0, Mp - M), (0, Kb - K)))
    out = pl.pallas_call(
        functools.partial(_matmul_kernel, activation=activation),
        out_shape=jax.ShapeDtypeStruct((Mp, Np), out_dtype),
        grid=(Mp // tm_eff, Np // tn_eff),
        in_specs=[
            pl.BlockSpec((tm_eff, Kb), lambda i, j: (i, 0)),
            pl.BlockSpec((Kb, tn_eff), lambda i, j: (0, j)),
            pl.BlockSpec((1, tn_eff), lambda i, j: (0, j)),
        ],
        out_specs=pl.BlockSpec((tm_eff, tn_eff), lambda i, j: (i, j)),
        compiler_params=pltpu.CompilerParams(
            dimension_semantics=("parallel", "parallel")),
    )(a_p, b, bias)
    return out[:M, :N]


def dense(a, prep, **kw):
    return pallas_matmul(a, prep["w"], prep["b"], n_out=prep["n"], **kw)


# ================= Pallas kernel: fused LayerNorm -> matmul ==================
def _ln_matmul_kernel(x_ref, g_ref, b_ref, w_ref, bias_ref, o_ref, *,
                      eps, activation):
    x = x_ref[...]
    mu = jnp.mean(x, axis=-1, keepdims=True)
    xc = x - mu
    var = jnp.mean(xc * xc, axis=-1, keepdims=True)
    y = xc * jax.lax.rsqrt(var + eps) * g_ref[...] + b_ref[...]
    acc = jnp.dot(y.astype(jnp.bfloat16), w_ref[...],
                  preferred_element_type=jnp.float32) + bias_ref[...]
    if activation == "gelu":
        acc = 0.5 * acc * (1.0 + _erf_approx(acc * _INV_SQRT2))
    elif activation == "relu":
        acc = jnp.maximum(acc, 0.0)
    o_ref[...] = acc.astype(o_ref.dtype)


def pallas_ln_matmul(x2d, gamma, beta, prep, *, activation=None,
                     out_dtype=jnp.bfloat16, eps=1e-5, tm=512):
    """out = act(LayerNorm(x) @ w + bias) with the whole (padded) N in one
    block (N <= 640 in this model), grid over row tiles only."""
    M, C = x2d.shape
    w, bias, N = prep["w"], prep["b"], prep["n"]
    Kb, Np = w.shape
    assert Kb == C, "LN-fused matmul requires unpadded K == C"
    Mp8 = _round_up(M, 8)
    tm_base = 1024 if Mp8 >= 4096 else tm
    tm_eff = min(tm_base, Mp8)
    if Mp8 <= tm_eff and Mp8 >= 16:
        tm_eff = _round_up(pl.cdiv(Mp8, 2), 8)
    Mp = _round_up(M, tm_eff)
    x_p = jnp.pad(x2d.astype(jnp.float32), ((0, Mp - M), (0, 0)))
    out = pl.pallas_call(
        functools.partial(_ln_matmul_kernel, eps=eps, activation=activation),
        out_shape=jax.ShapeDtypeStruct((Mp, Np), out_dtype),
        grid=(Mp // tm_eff,),
        in_specs=[
            pl.BlockSpec((tm_eff, C), lambda i: (i, 0)),
            pl.BlockSpec((1, C), lambda i: (0, 0)),
            pl.BlockSpec((1, C), lambda i: (0, 0)),
            pl.BlockSpec((C, Np), lambda i: (0, 0)),
            pl.BlockSpec((1, Np), lambda i: (0, 0)),
        ],
        out_specs=pl.BlockSpec((tm_eff, Np), lambda i: (i, 0)),
        compiler_params=pltpu.CompilerParams(dimension_semantics=("parallel",)),
    )(x_p, gamma.reshape(1, C), beta.reshape(1, C), w, bias)
    return out[:M, :N]


# ===================== Pallas kernel: windowed self-attention ================
def _window_attn_kernel(*refs, num_heads, has_mask):
    if has_mask:
        q_ref, k_ref, v_ref, rb_ref, hm_ref, m_ref, o_ref = refs
    else:
        q_ref, k_ref, v_ref, rb_ref, hm_ref, o_ref = refs
        m_ref = None
    wb, n, c = q_ref.shape
    q = q_ref[...]                       # (wb, N, C) bf16; scale pre-folded
    k = k_ref[...]
    v = v_ref[...]
    hm = hm_ref[...]                     # (heads, C) 0/1 bf16 channel masks
    acc = jnp.zeros((wb, n, c), jnp.float32)
    for h in range(num_heads):           # static unroll; heads never leave C
        mask_h = hm[h]
        s = jnp.einsum("bnc,bmc->bnm", q * mask_h, k,
                       preferred_element_type=jnp.float32)
        s = s + rb_ref[h][None]                              # rel-pos bias
        if has_mask:
            s = s + m_ref[...]                               # shift mask
        s = s - jnp.max(s, axis=-1, keepdims=True)
        p = jnp.exp(s)
        p = p * pl.reciprocal(jnp.sum(p, axis=-1, keepdims=True), approx=True)
        acc = acc + jnp.einsum("bnm,bmc->bnc", p.astype(jnp.bfloat16),
                               v * mask_h, preferred_element_type=jnp.float32)
    o_ref[...] = acc.astype(o_ref.dtype)


def pallas_window_attention(q, k, v, rel_bias, head_mask, mask, *,
                            num_heads, wb, nW):
    """q,k,v: (BW, N, C) bf16 (lane-dense); rel_bias: (heads, N, N) f32;
    head_mask: (heads, C) bf16; mask: (nW, N, N) f32 or None."""
    BW, N, C = q.shape
    has_mask = mask is not None
    kern = functools.partial(_window_attn_kernel, num_heads=num_heads,
                             has_mask=has_mask)
    in_specs = [
        pl.BlockSpec((wb, N, C), lambda i: (i, 0, 0)),
        pl.BlockSpec((wb, N, C), lambda i: (i, 0, 0)),
        pl.BlockSpec((wb, N, C), lambda i: (i, 0, 0)),
        pl.BlockSpec((num_heads, N, N), lambda i: (0, 0, 0)),
        pl.BlockSpec((num_heads, C), lambda i: (0, 0)),
    ]
    args = [q, k, v, rel_bias, head_mask]
    if has_mask:
        mw = max(nW // wb, 1)
        in_specs.append(pl.BlockSpec((wb, N, N),
                                     lambda i, mw=mw: (i % mw, 0, 0)))
        args.append(mask)
    return pl.pallas_call(
        kern,
        out_shape=jax.ShapeDtypeStruct((BW, N, C), jnp.bfloat16),
        grid=(BW // wb,),
        in_specs=in_specs,
        out_specs=pl.BlockSpec((wb, N, C), lambda i: (i, 0, 0)),
        compiler_params=pltpu.CompilerParams(dimension_semantics=("parallel",)),
    )(*args)


# ================== Pallas kernel: Gaussian conditional ======================
def _std_normal_cdf(x):
    return 0.5 * (1.0 - _erf_approx(-x * _INV_SQRT2))


def _gaussian_conditional_kernel(y_ref, s_ref, m_ref, yhat_ref, lik_ref):
    y = y_ref[...]
    m = m_ref[...]
    s = jnp.maximum(s_ref[...], SCALES_MIN)
    # inference quantization (quant_mode='RUN'): round residual, re-add mean.
    q = jnp.floor(y - m + 0.5)  # TODO(synk): torch.round is half-to-even; differs only at exact halves.
    y_hat = q + m
    v = jnp.abs(q)
    upper = _std_normal_cdf((0.5 - v) / s)
    lower = _std_normal_cdf((-0.5 - v) / s)
    yhat_ref[...] = y_hat
    lik_ref[...] = jnp.maximum(upper - lower, LIKELIHOOD_BOUND)


def pallas_gaussian_conditional(y2d, scales2d, means2d):
    M, C = y2d.shape
    Mp = _round_up(M, 8)
    pad = ((0, Mp - M), (0, 0))
    y_p, s_p, m_p = (jnp.pad(a.astype(jnp.float32), pad)
                     for a in (y2d, scales2d, means2d))
    spec = pl.BlockSpec((Mp, C), lambda i: (0, 0))
    y_hat, lik = pl.pallas_call(
        _gaussian_conditional_kernel,
        out_shape=(jax.ShapeDtypeStruct((Mp, C), jnp.float32),
                   jax.ShapeDtypeStruct((Mp, C), jnp.float32)),
        grid=(1,),
        in_specs=[spec, spec, spec],
        out_specs=(spec, spec),
    )(y_p, s_p, m_p)
    return y_hat[:M], lik[:M]


# ============================== conv / deconv ================================
def _conv_core(x_padded, prep, stride, activation=None, out_dtype=jnp.float32):
    """Correlation on an already-padded NHWC input via im2col + Pallas matmul.
    Patches stay (..., kh*kw, Cin); the weight was pre-ordered to match."""
    x_padded = x_padded.astype(jnp.bfloat16)
    B, Hp, Wp, Cin = x_padded.shape
    kh, kw = prep["kh"], prep["kw"]
    Ho = (Hp - kh) // stride + 1
    Wo = (Wp - kw) // stride + 1
    cols = []
    for i in range(kh):
        for j in range(kw):
            cols.append(x_padded[:, i:i + stride * (Ho - 1) + 1:stride,
                                 j:j + stride * (Wo - 1) + 1:stride, :])
    patches = jnp.stack(cols, axis=3).reshape(B * Ho * Wo, kh * kw * Cin)
    out = pallas_matmul(patches, prep["w"], prep["b"], n_out=prep["n"],
                        activation=activation, out_dtype=out_dtype)
    return out.reshape(B, Ho, Wo, prep["n"])


def conv2d(x, prep, stride, activation=None):
    """compressai conv: Conv2d(cin, cout, k, stride, padding=k//2). NHWC."""
    k = prep["kh"]
    p = k // 2
    x_p = jnp.pad(x.astype(jnp.bfloat16), ((0, 0), (p, p), (p, p), (0, 0)))
    return _conv_core(x_p, prep, stride, activation=activation)


def _pad_or_crop(x, axis, lo, hi):
    if lo < 0:
        idx = [slice(None)] * x.ndim
        idx[axis] = slice(-lo, None)
        x = x[tuple(idx)]
        lo = 0
    if lo or hi:
        pads = [(0, 0)] * x.ndim
        pads[axis] = (lo, hi)
        x = jnp.pad(x, pads)
    return x


def deconv2d(x, prep, activation=None):
    """compressai deconv: ConvTranspose2d(cin, cout, k, stride,
    output_padding=stride-1, padding=k//2).  All s^2 sub-pixel phases were
    fused at param-build time into ONE stride-1 conv weight over a shared
    window (zero taps where a phase does not reach), so the whole deconv is a
    single im2col + matmul followed by depth-to-space."""
    B, H, W, _ = x.shape
    s, Cout = prep["s"], prep["cout"]
    lo_r, hi_r = prep["pad_r"]
    lo_c, hi_c = prep["pad_c"]
    xp = _pad_or_crop(x.astype(jnp.bfloat16), 1, lo_r, hi_r)
    xp = _pad_or_crop(xp, 2, lo_c, hi_c)
    ph = _conv_core(xp, prep, stride=1, activation=activation)  # (B,H,W,s*s*Cout)
    out = ph.reshape(B, H, W, s, s, Cout).transpose(0, 1, 3, 2, 4, 5)
    return out.reshape(B, H * s, W * s, Cout)


# ================================ Swin blocks ================================
def window_partition(x, ws):
    B, H, W, C = x.shape
    x = x.reshape(B, H // ws, ws, W // ws, ws, C)
    return x.transpose(0, 1, 3, 2, 4, 5).reshape(-1, ws * ws, C)


def window_reverse(wins, ws, B, H, W):
    C = wins.shape[-1]
    x = wins.reshape(B, H // ws, W // ws, ws, ws, C)
    return x.transpose(0, 1, 3, 2, 4, 5).reshape(B, H, W, C)


@functools.lru_cache(maxsize=None)
def _relative_position_index(ws):
    coords = np.stack(np.meshgrid(np.arange(ws), np.arange(ws), indexing="ij"))
    coords = coords.reshape(2, -1)
    rel = coords[:, :, None] - coords[:, None, :]
    rel = rel.transpose(1, 2, 0).astype(np.int32)
    rel[:, :, 0] += ws - 1
    rel[:, :, 1] += ws - 1
    rel[:, :, 0] *= 2 * ws - 1
    return rel.sum(-1)                                        # (N, N)


def _shift_attn_mask(H, W, ws, shift):
    img = np.zeros((1, H, W, 1), np.float32)
    cnt = 0
    for hs in (slice(0, -ws), slice(-ws, -shift), slice(-shift, None)):
        for wsl in (slice(0, -ws), slice(-ws, -shift), slice(-shift, None)):
            img[:, hs, wsl, :] = cnt
            cnt += 1
    mw = img.reshape(1, H // ws, ws, W // ws, ws, 1)
    mw = mw.transpose(0, 1, 3, 2, 4, 5).reshape(-1, ws * ws)
    diff = mw[:, None, :] - mw[:, :, None]
    return jnp.asarray(np.where(diff != 0, -100.0, 0.0).astype(np.float32))


def swin_block_forward(tokens, H, W, p, num_heads, ws, shifted, shift_mask):
    B, L, C = tokens.shape
    shift = ws // 2 if shifted else 0
    nW = (H // ws) * (W // ws)
    N = ws * ws

    shortcut = tokens
    # LN fused into the qkv projection (scale already folded into the q slice)
    qkv = pallas_ln_matmul(tokens.reshape(-1, C), p["ln1_g"], p["ln1_b"],
                           p["qkv"], out_dtype=jnp.bfloat16)    # (B*L, 3C) bf16
    qkv = qkv.reshape(B, H, W, 3 * C)
    if shift > 0:
        qkv = jnp.roll(qkv, shift=(-shift, -shift), axis=(1, 2))
    qkvw = window_partition(qkv, ws)                            # (BW, N, 3C)
    q, k, v = qkvw[..., :C], qkvw[..., C:2 * C], qkvw[..., 2 * C:]
    BW = qkvw.shape[0]

    wb = min(_ATTN_WB, nW) if shifted else min(_ATTN_WB, BW)
    while wb > 1 and (BW % wb != 0 or (shifted and nW % wb != 0)):
        wb //= 2

    attn = pallas_window_attention(
        q, k, v, p["rel_bias"], p["head_mask"],
        shift_mask if shifted else None,
        num_heads=num_heads, wb=wb, nW=nW)                      # (BW, N, C) bf16

    attn = dense(attn.reshape(BW * N, C), p["proj"]).reshape(BW, N, C)
    x = window_reverse(attn, ws, B, H, W)
    if shift > 0:
        x = jnp.roll(x, shift=(shift, shift), axis=(1, 2))
    x = shortcut + x.reshape(B, L, C)

    h = pallas_ln_matmul(x.reshape(-1, C), p["ln2_g"], p["ln2_b"], p["fc1"],
                         activation="gelu", out_dtype=jnp.bfloat16)
    h = dense(h, p["fc2"])
    return x + h.reshape(B, L, C)


def rstb_forward(x, blocks, num_heads, window_size):
    B, H, W, C = x.shape
    ws = window_size        # construction resolution (256,256) never clamps ws/shift
    shift_mask = (_shift_attn_mask(H, W, ws, ws // 2)
                  if len(blocks) > 1 else None)
    tokens = x.reshape(B, H * W, C)
    res = tokens
    for bi, bp in enumerate(blocks):
        shifted = (bi % 2 == 1)
        tokens = swin_block_forward(tokens, H, W, bp, num_heads, ws, shifted,
                                    shift_mask if shifted else None)
    # TODO(synk): SwinIR-style RSTB applies a 3x3 conv before the group residual; omitted here.
    tokens = tokens + res
    return tokens.reshape(B, H, W, C)


# ======================= factorized entropy bottleneck =======================
def entropy_bottleneck_forward(z_nchw, eb):
    # Tiny per-channel scalar recursion (z is a few hundred elems) -> plain JAX.
    B, C, H, W = z_nchw.shape
    z_hat = jnp.round(z_nchw)                   # medians are 0 at init
    v = z_hat.transpose(1, 0, 2, 3).reshape(C, 1, -1)

    def logits_cumulative(x):
        logits = x
        n = len(eb["matrices"])
        for i in range(n):
            logits = jax.nn.softplus(eb["matrices"][i]) @ logits + eb["biases"][i]
            if i < n - 1:
                logits = logits + jnp.tanh(eb["factors"][i]) * jnp.tanh(logits)
        return logits

    lower = logits_cumulative(v - 0.5)
    upper = logits_cumulative(v + 0.5)
    sign = -jnp.sign(lower + upper)
    lik = jnp.abs(jax.nn.sigmoid(sign * upper) - jax.nn.sigmoid(sign * lower))
    lik = jnp.maximum(lik, LIKELIHOOD_BOUND)
    lik = lik.reshape(C, B, H, W).transpose(1, 0, 2, 3)
    return z_hat, lik


# ============================ parameter construction =========================
class _KeyGen:
    def __init__(self, seed):
        self._key = jax.random.PRNGKey(seed)

    def __call__(self):
        self._key, sub = jax.random.split(self._key)
        return sub


def _trunc_normal(key, shape, std=0.02):
    return std * jax.random.truncated_normal(key, -2.0, 2.0, shape, jnp.float32)


def _init_conv(kg, cin, cout, k):
    return _trunc_normal(kg(), (cout, cin, k, k)), jnp.zeros((cout,), jnp.float32)


def _init_deconv(kg, cin, cout, k):
    return _trunc_normal(kg(), (cin, cout, k, k)), jnp.zeros((cout,), jnp.float32)


def _prep_dense(w, b, *, scale_cols=None, scale=1.0):
    """(K, N) weight -> bf16, K padded to x8, N padded to x128, f32 bias."""
    if scale_cols is not None:
        w = w.at[:, :scale_cols].multiply(scale)
        b = b.at[:scale_cols].multiply(scale)
    K, N = w.shape
    Kp = _round_up(K, 8)
    Np = _round_up(N, 128)
    wp = jnp.pad(w.astype(jnp.float32), ((0, Kp - K), (0, Np - N))).astype(jnp.bfloat16)
    bp = jnp.pad(b.astype(jnp.float32), (0, Np - N)).reshape(1, Np)
    return {"w": wp, "b": bp, "n": N, "k": K}


def _prep_conv(w, b):
    """Conv2d weight (Cout,Cin,kh,kw) -> im2col-ordered (kh*kw*Cin, Cout)."""
    Cout, Cin, kh, kw = w.shape
    wm = jnp.transpose(w, (2, 3, 1, 0)).reshape(kh * kw * Cin, Cout)
    d = _prep_dense(wm, b)
    d.update({"kh": kh, "kw": kw})
    return d


def _prep_deconv(w, b, stride):
    """ConvTranspose2d weight (Cin,Cout,kh,kw) -> single fused stride-1 conv
    weight covering all s^2 sub-pixel phases (depth-to-space assembled)."""
    w_np = np.asarray(w, np.float32)
    b_np = np.asarray(b, np.float32)
    Cin, Cout, kh, kw = w_np.shape
    s = stride

    def phase_infos(k, pad):
        infos = []
        for r in range(s):
            k0 = (r + pad) % s
            d = (r + pad) // s
            T = (k - 1 - k0) // s + 1 if k0 <= k - 1 else 0
            infos.append((k0, d, T))
        omin = min(d - (T - 1) for (_, d, T) in infos if T > 0)
        omax = max(d for (_, d, T) in infos if T > 0)
        return infos, omin, omax

    rinfo, romin, romax = phase_infos(kh, kh // 2)
    cinfo, comin, comax = phase_infos(kw, kw // 2)
    Twr = romax - romin + 1
    Twc = comax - comin + 1
    Wf = np.zeros((Twr, Twc, Cin, s, s, Cout), np.float32)
    for r, (k0r, dr, Tr) in enumerate(rinfo):
        for tr in range(Tr):
            u = dr - romin - tr
            kr = k0r + s * tr
            for c, (k0c, dc, Tc) in enumerate(cinfo):
                for tc in range(Tc):
                    vp = dc - comin - tc
                    kc = k0c + s * tc
                    Wf[u, vp, :, r, c, :] = w_np[:, :, kr, kc]
    w_mat = jnp.asarray(Wf.reshape(Twr * Twc * Cin, s * s * Cout))
    bias = jnp.asarray(np.tile(b_np, s * s))
    d = _prep_dense(w_mat, bias)
    d.update({"kh": Twr, "kw": Twc, "s": s, "cout": Cout,
              "pad_r": (-romin, romax), "pad_c": (-comin, comax)})
    return d


def _init_swin_block(kg, dim, heads, ws, mlp_ratio):
    hidden = int(dim * mlp_ratio)
    return {
        "ln1_g": jnp.ones((dim,), jnp.float32), "ln1_b": jnp.zeros((dim,), jnp.float32),
        "qkv_w": _trunc_normal(kg(), (dim, 3 * dim)), "qkv_b": jnp.zeros((3 * dim,), jnp.float32),
        "rel_table": _trunc_normal(kg(), ((2 * ws - 1) ** 2, heads)),
        "proj_w": _trunc_normal(kg(), (dim, dim)), "proj_b": jnp.zeros((dim,), jnp.float32),
        "ln2_g": jnp.ones((dim,), jnp.float32), "ln2_b": jnp.zeros((dim,), jnp.float32),
        "fc1_w": _trunc_normal(kg(), (dim, hidden)), "fc1_b": jnp.zeros((hidden,), jnp.float32),
        "fc2_w": _trunc_normal(kg(), (hidden, dim)), "fc2_b": jnp.zeros((dim,), jnp.float32),
    }


def _prep_swin_block(raw, dim, heads, ws):
    hd = dim // heads
    scale = hd ** -0.5
    N = ws * ws
    idx = _relative_position_index(ws).reshape(-1)
    rb = np.asarray(raw["rel_table"], np.float32)[idx]
    rb = rb.reshape(N, N, heads).transpose(2, 0, 1)            # (heads, N, N)
    head_mask = np.zeros((heads, dim), np.float32)
    for h in range(heads):
        head_mask[h, h * hd:(h + 1) * hd] = 1.0
    return {
        "ln1_g": raw["ln1_g"], "ln1_b": raw["ln1_b"],
        "ln2_g": raw["ln2_g"], "ln2_b": raw["ln2_b"],
        # attention scale folded into the q columns of the qkv projection
        "qkv": _prep_dense(raw["qkv_w"], raw["qkv_b"], scale_cols=dim, scale=scale),
        "proj": _prep_dense(raw["proj_w"], raw["proj_b"]),
        "fc1": _prep_dense(raw["fc1_w"], raw["fc1_b"]),
        "fc2": _prep_dense(raw["fc2_w"], raw["fc2_b"]),
        "rel_bias": jnp.asarray(rb),
        "head_mask": jnp.asarray(head_mask, dtype=jnp.bfloat16),
    }


def _init_entropy_bottleneck(kg, channels, filters=(3, 3, 3, 3), init_scale=10.0):
    f = (1,) + tuple(filters) + (1,)
    scale = init_scale ** (1.0 / (len(filters) + 1))
    mats, biases, factors = [], [], []
    for i in range(len(filters) + 1):
        init = math.log(math.expm1(1.0 / scale / f[i + 1]))
        mats.append(jnp.full((channels, f[i + 1], f[i]), init, jnp.float32))
        biases.append(jax.random.uniform(kg(), (channels, f[i + 1], 1),
                                         jnp.float32, -0.5, 0.5))
        if i < len(filters):
            factors.append(jnp.zeros((channels, f[i + 1], 1), jnp.float32))
    return {"matrices": mats, "biases": biases, "factors": factors}


def build_params(seed=0):
    """Builds randomly-initialized parameters and prepares them for the Pallas
    kernels (bf16 casts, padding, im2col / sub-pixel weight reordering,
    rel-pos bias gather, attention scale folding) once, up front."""
    kg = _KeyGen(seed)
    params = {}

    # analysis: conv_i (stride scale_list[i]) followed by RSTB_i
    dims_in = [INPUT_DIM] + DIMS
    ana = []
    for i in range(len(DEPTHS)):
        cw, cb = _init_conv(kg, dims_in[i], dims_in[i + 1], KERNEL_SIZE[i])
        blocks = []
        for _ in range(DEPTHS[i]):
            raw = _init_swin_block(kg, DIMS[i], NUM_HEADS[i], WINDOW_SIZE[i], MLP_RATIO)
            blocks.append(_prep_swin_block(raw, DIMS[i], NUM_HEADS[i], WINDOW_SIZE[i]))
        ana.append({"conv": _prep_conv(cw, cb), "blocks": blocks})
    params["analysis"] = ana

    # Google hyper transforms (mean-scale hyperprior convention of this family)
    nf, nfl, nh = HYPER_DIM
    params["hyper_analysis"] = [
        (_prep_conv(*_init_conv(kg, nf, nfl, 3)), 1),
        (_prep_conv(*_init_conv(kg, nfl, nfl, 5)), 2),
        (_prep_conv(*_init_conv(kg, nfl, nh, 5)), 2),
    ]
    params["hyper_synthesis"] = [
        _prep_deconv(*_init_deconv(kg, nh, nfl, 5), stride=2),
        _prep_deconv(*_init_deconv(kg, nfl, nfl * 3 // 2, 5), stride=2),
        _prep_deconv(*_init_deconv(kg, nfl * 3 // 2, DIMS[-1] * 2, 3), stride=1),
    ]

    params["entropy_bottleneck"] = _init_entropy_bottleneck(kg, HYPER_DIM[-1])

    # synthesis: configs reversed; RSTB_i then deconv_i
    up, sdims = SCALE_LIST[::-1], DIMS[::-1] + [INPUT_DIM]
    sk, sdepths = KERNEL_SIZE[::-1], DEPTHS[::-1]
    sheads, sws = NUM_HEADS[::-1], WINDOW_SIZE[::-1]
    syn = []
    for i in range(len(sdepths)):
        blocks = []
        for _ in range(sdepths[i]):
            raw = _init_swin_block(kg, sdims[i], sheads[i], sws[i], MLP_RATIO)
            blocks.append(_prep_swin_block(raw, sdims[i], sheads[i], sws[i]))
        dw, db = _init_deconv(kg, sdims[i], sdims[i + 1], sk[i])
        syn.append({"blocks": blocks, "deconv": _prep_deconv(dw, db, stride=up[i])})
    params["synthesis"] = syn
    return params


# ================================== forward ==================================
def qualcomm_swin_hyperprior_forward(params, x_nchw):
    x = x_nchw.astype(jnp.float32).transpose(0, 2, 3, 1)      # NCHW -> NHWC

    # ---- analysis ----
    for i, stage in enumerate(params["analysis"]):
        x = conv2d(x, stage["conv"], stride=SCALE_LIST[i])
        x = rstb_forward(x, stage["blocks"], NUM_HEADS[i], WINDOW_SIZE[i])
    y = x
    B, yh, yw, yc = y.shape

    # ---- hyper analysis (ReLU fused into the conv matmul epilogue) ----
    h = y
    n_ha = len(params["hyper_analysis"])
    for li, (cp, stride) in enumerate(params["hyper_analysis"]):
        act = "relu" if li < n_ha - 1 else None
        h = conv2d(h, cp, stride=stride, activation=act)
    z = h.transpose(0, 3, 1, 2)                               # NCHW

    # ---- factorized entropy bottleneck ----
    z_hat, z_lik = entropy_bottleneck_forward(z, params["entropy_bottleneck"])

    # ---- hyper synthesis (fused sub-pixel deconvs, ReLU fused) ----
    h = z_hat.transpose(0, 2, 3, 1)
    n_hs = len(params["hyper_synthesis"])
    for li, dp in enumerate(params["hyper_synthesis"]):
        act = "relu" if li < n_hs - 1 else None
        h = deconv2d(h, dp, activation=act)
    scales_hat, means_hat = h[..., :yc], h[..., yc:]          # == chunk(2, dim=1)

    # ---- gaussian conditional (Pallas elementwise kernel) ----
    y_hat2d, y_lik2d = pallas_gaussian_conditional(
        y.reshape(-1, yc), scales_hat.reshape(-1, yc), means_hat.reshape(-1, yc))
    y_hat = y_hat2d.reshape(B, yh, yw, yc)
    y_lik = y_lik2d.reshape(B, yh, yw, yc)

    # ---- synthesis ----
    syn_heads = NUM_HEADS[::-1]
    syn_ws = WINDOW_SIZE[::-1]
    x = y_hat
    for i, stage in enumerate(params["synthesis"]):
        x = rstb_forward(x, stage["blocks"], syn_heads[i], syn_ws[i])
        x = deconv2d(x, stage["deconv"])
    x_hat = x.transpose(0, 3, 1, 2)                           # NHWC -> NCHW

    likelihoods = (y_lik.transpose(0, 3, 1, 2), z_lik)
    extra = {"mean": means_hat.transpose(0, 3, 1, 2),
             "scale": scales_hat.transpose(0, 3, 1, 2)}
    return x_hat, likelihoods, extra


# ==================================== main ===================================
if __name__ == "__main__":
    # 128x128 is the smallest input keeping every Swin stage resolution
    # (H/2, H/8, H/16) a multiple of the window size 8 the architecture implies.
    key = jax.random.PRNGKey(0)
    x = jax.random.normal(key, (2, 3, 128, 128), jnp.float32)

    params = build_params(seed=0)
    x_hat, (y_lik, z_lik), extra = qualcomm_swin_hyperprior_forward(params, x)
    jax.block_until_ready((x_hat, y_lik, z_lik, extra["mean"], extra["scale"]))

    assert x_hat.shape == (2, 3, 128, 128)
    assert y_lik.shape == (2, 192, 8, 8)
    assert z_lik.shape == (2, 192, 2, 2)
    assert extra["mean"].shape == (2, 192, 8, 8)
    print("KERNEL_OK")
</pallas_src>

<mosaic_0001>
module attributes {stable_mosaic.version = 11 : i64} {
  func.func @_matmul_kernel(%arg0: i32, %arg1: i32, %arg2: memref<1024x80xbf16, #tpu.memory_space<vmem>>, %arg3: memref<80x128xbf16, #tpu.memory_space<vmem>>, %arg4: memref<1x128xf32, #tpu.memory_space<vmem>>, %arg5: memref<1024x128xf32, #tpu.memory_space<vmem>>) attributes {dimension_semantics = [#tpu.dimension_semantics<parallel>, #tpu.dimension_semantics<parallel>], iteration_bounds = array<i64: 8, 1>, scalar_prefetch = 0 : i64, scratch_operands = 0 : i64, tpu.core_type = #tpu.core_type<tc>, window_params = [{transform_indices = @transform_0, window_bounds = array<i64: 1024, 80>}, {transform_indices = @transform_1, window_bounds = array<i64: 80, 128>}, {transform_indices = @transform_2, window_bounds = array<i64: 1, 128>}, {transform_indices = @transform_3, window_bounds = array<i64: 1024, 128>}]} {
    %c0 = arith.constant 0 : index
    %c0_0 = arith.constant 0 : index
    %0 = vector.load %arg2[%c0, %c0_0] : memref<1024x80xbf16, #tpu.memory_space<vmem>>, vector<1024x80xbf16>
    %c0_1 = arith.constant 0 : index
    %c0_2 = arith.constant 0 : index
    %1 = vector.load %arg3[%c0_1, %c0_2] : memref<80x128xbf16, #tpu.memory_space<vmem>>, vector<80x128xbf16>
    %cst = arith.constant dense<0.000000e+00> : vector<1024x128xf32>
    %2 = tpu.matmul %0, %1, %cst {dimension_numbers = #tpu.dot_dimension_numbers<[1], [0], [0], [1], [0, 0, 1, 1], [], []>} : vector<1024x80xbf16>, vector<80x128xbf16>, vector<1024x128xf32> -> vector<1024x128xf32>
    %c0_3 = arith.constant 0 : index
    %c0_4 = arith.constant 0 : index
    %3 = vector.load %arg4[%c0_3, %c0_4] : memref<1x128xf32, #tpu.memory_space<vmem>>, vector<1x128xf32>
    %4 = vector.broadcast %3 : vector<1x128xf32> to vector<1024x128xf32>
    %5 = arith.addf %2, %4 : vector<1024x128xf32>
    %c0_5 = arith.constant 0 : index
    %c0_6 = arith.constant 0 : index
    %6 = vector.load %arg5[%c0_5, %c0_6] : memref<1024x128xf32, #tpu.memory_space<vmem>>, vector<1024x128xf32>
    tpu.vector_store %arg5[%c0_5, %c0_6], %5 {strides = array<i32>} : memref<1024x128xf32, #tpu.memory_space<vmem>>, vector<1024x128xf32>,
    return
  }
  func.func @transform_0(%arg0: i32, %arg1: i32) -> (i32, i32) {
    %c0_i32 = arith.constant 0 : i32
    %c0_i32_0 = arith.constant 0 : i32
    return %arg0, %c0_i32 : i32, i32
  }
  func.func @transform_1(%arg0: i32, %arg1: i32) -> (i32, i32) {
    %c0_i32 = arith.constant 0 : i32
    %c0_i32_0 = arith.constant 0 : i32
    return %c0_i32, %arg1 : i32, i32
  }
  func.func @transform_2(%arg0: i32, %arg1: i32) -> (i32, i32) {
    %c0_i32 = arith.constant 0 : i32
    %c0_i32_0 = arith.constant 0 : i32
    return %c0_i32, %arg1 : i32, i32
  }
  func.func @transform_3(%arg0: i32, %arg1: i32) -> (i32, i32) {
    %c0_i32 = arith.constant 0 : i32
    return %arg0, %arg1 : i32, i32
  }
}

</mosaic_0001>

<bundles_post_ra>
// kernel: tpu_custom_call.1
= control target key start
LH: loop header
LB: loop body
LE: loop exit
PB: predicated region body
PF: predicated region fallthrough
CT: control target
= control target key end

     0   :  { %8 = vsyncpa [#allocation3], 0  ;;  %s2813_s0 = inlined_call_operand.vmem [shape: bf16[8192,80], index: 0, kind: input, shape index: {}]   ;;  %s2814_s1 = inlined_call_operand.vmem [shape: bf16[80,128], index: 1, kind: input, shape index: {}]   ;;  %s2815_s2 = inlined_call_operand.vmem [shape: f32[1,128], index: 2, kind: input, shape index: {}]   ;;  %s2816_s3 = inlined_call_operand.hbm [shape: f32[8192,128], index: 3, kind: output, shape index: {}]  }
   0x1   :  { %10 = vsyncpa [#allocation3 + $0x1], 0  ;;  %s2287_s12 = smov 0   ;;  %s2289_s13 = smov 0  }
   0x2   :  { %s2291_s14 = smov 0   ;;  %s2293_s15 = smov 0  }
   0x3   :  { %s2295_s16 = smov 0   ;;  %s2297_s17 = smov 0  }
   0x4 LB: > { %s1693_s18 = sadd.s32 4294967295, %s2262_s17   ;;  %s1694_s19 = sadd.s32 4294967294, %s2262_s17   ;;  %s2262_s17 = sphi %s2297_s17, %s16_s17   ;;  %s2258_s16 = sphi %s2295_s16, %s2823_s16   ;;  %s2254_s15 = sphi %s2293_s15, %s2822_s15   ;;  %s2250_s14 = sphi %s2291_s14, %s2821_s14   ;;  %s2246_s13 = sphi %s2289_s13, %s2820_s13   ;;  %s2242_s12 = sphi %s2287_s12, %s2819_s12  }
   0x5   : > { %s28_s20 = sadd.s32 1, %s2258_s16  ;;  %s115_s21 = sadd.s32 1, %s2250_s14 }
   0x6   : > { %p30_p0 = scmp.ge.s32.totalorder %s28_s20, 8  ;;  %p125_p1 = scmp.ne.s32.totalorder %s2250_s14, %s2246_s13 }
   0x7   : > { %p126_p2 = scmp.eq.s32.totalorder %s1693_s18, 7  ;;  %p131_p3 = scmp.ne.s32.totalorder %s2246_s13, %s2242_s12 }
   0x8   : > { %s2825_s20 = smov (%p30_p0, %s28_s20), 0  ;;  %p132_p5 = scmp.eq.s32.totalorder %s1694_s19, 7 }
   0x9   : > { %p2327_p4 = por %p126_p2, %p125_p1  ;;  %s110_s23 = ssub.s32 %s2258_s16, %s2825_s20 }
   0xa   : > { %p1699_p6 = scmp.ge.s32.totalorder %s2262_s17, 1  ;;  %p113_p7 = scmp.eq.s32.totalorder %s110_s23, 0 }
   0xb   : > { %p2334_p8 = por %p132_p5, %p131_p3  ;;  %p172_p9 = scmp.lt.s32.totalorder %s2262_s17, 9 }
   0xc   : > { %s2340_s25 = scalar_select %p113_p7, %s2250_s14, %s115_s21  }
   0xd   : > { %p173_p10 = pnand %p1699_p6, %p172_p9 }
   0xe   : > { %s1701_s28 = sshll.u32 (!%p173_p10), %s2254_s15, 7  ;;  %s200_s21 = sand.u32 (!%p173_p10), 1, %s2246_s13  }
   0xf   : > { %176 = sbr.rel (%p173_p10) target bundleno = 376 (0x178), region = 32  ;;  %p204_p11 = scmp.lt.s32.totalorder (!%p173_p10), %s1701_s28, 1023 }
  0x10   : > { %s1700_s23 = sshll.u32 (!%p173_p10), %s200_s21, 10  ;;  %s1842_s29 = sshll.u32 (!%p173_p10), %s2254_s15, 14 }
  0x11   : > { %s2768_s15 = scalar_lea.sflag (!%p173_p10), [#allocation3], %s200_s21  ;;  %s2264_s8 = smov (!%p173_p10), [#allocation2]  }
  0x12   : > { %s2190_s9 = sshll.u32 (!%p173_p10), %s2264_s8, 4  ;;  %s2191_s9 = int_to_ptr.vmem [resolvable:$false] %s2190_s9 }
  0x13   : > { %s2192_s10 = scalar_lea.vmem (!%p173_p10), %s2191_s9, 32768 }
  0x14   : > { %v2117_v0 = vld [vmem:[%s2814_s1 + $0x20] sm:$0xff]   ;;  %v2118_v1 = vld [vmem:[%s2814_s1 + $0x18] sm:$0xff]   ;;  %s2827_s28 = smov (!%p204_p11, %s1701_s28), 1023  ;;  %v2119_v2 = vld [vmem:[%s2814_s1 + $0x10] sm:$0xff]   ;;  %vm713_vm0 = vcmask 654336  }
  0x15   : > { %1912 = vmatprep.subr.bf16.mxu0 %v2117_v0  ;;  %2050 = vmatprep.subr.bf16.mxu1 %v2117_v0  ;;  %s1702_s6 = sshll.u32 %s2827_s28, 2  ;;  %v2120_v3 = vld [vmem:[%s2814_s1 + $0x8] sm:$0xff]   ;;  %v2121_v6 = vld [vmem:[%s2814_s1] sm:$0xff]   ;;  %s2501_s28 = scalar_lea.vmem [#allocation2], %s1700_s23 }
  0x16   : > { %1913 = vmatpush3.bf16.msra.mxu0 %v2117_v0  ;;  %2055 = vmatpush3.bf16.msra.mxu1 %v2117_v0  ;;  %s2358_s11 = scalar_lea.vmem %s2813_s0, %s1702_s6  ;;  %s1594_s30 = sshll.u32 %s2501_s28, 4  ;;  %s2758_s30 = int_to_ptr.vmem [resolvable:$true] %s1594_s30 }
  0x17   : > { %1914 = vmatprep.subr.bf16.mxu0 %v2118_v1  ;;  %2051 = vmatprep.subr.bf16.mxu1 %v2118_v1  ;;  %v2122_v4 = vld [vmem:[%s2358_s11] sm:$0xff]   ;;  %v2124_v7 = vld [vmem:[%s2358_s11 + $0x8] sm:$0xff]   ;;  %v2126_v9 = vld [vmem:[%s2358_s11 + $0x10] sm:$0xff]   ;;  %s2756_s6 = scalar_lea.hbm %s2816_s3, %s1842_s29  ;;  %s2186_s7 = scalar_lea.vmem %s2758_s30, 16384 }
  0x18   : > { %v2123_v5 = vld [vmem:[%s2358_s11 + $0x100] sm:$0xff]   ;;  %1922 = vmatprep.mubr.msk.bf16.mxu0 %vm713_vm0, %v2122_v4  ;;  %v2125_v8 = vld [vmem:[%s2358_s11 + $0x108] sm:$0xff]   ;;  %v2127_v10 = vld [vmem:[%s2358_s11 + $0x110] sm:$0xff]   ;;  %p2187_p12 = scmp.ne.s32.totalorder %s2758_s30, %s2186_s7  ;;  %p2193_p1 = scmp.lt.s32.totalorder %s2758_s30, %s2191_s9 }
  0x19   : > { %1986 = vmatprep.mubr.msk.bf16.mxu1 %vm713_vm0, %v2123_v5  ;;  %v2128_v11 = vld [vmem:[%s2358_s11 + $0x18] sm:$0xff]   ;;  %v2130_v13 = vld [vmem:[%s2358_s11 + $0x20] sm:$0xff]   ;;  %v2132_v15 = vld [vmem:[%s2358_s11 + $0x28] sm:$0xff]   ;;  %p2194_p2 = scmp.lt.s32.totalorder %s2192_s10, %s2186_s7 }
  0x1a   : > { %1915 = vmatpush3.bf16.msra.mxu0 %v2118_v1  ;;  %2056 = vmatpush3.bf16.msra.mxu1 %v2118_v1  ;;  %v2129_v12 = vld [vmem:[%s2358_s11 + $0x118] sm:$0xff]   ;;  %v2131_v14 = vld [vmem:[%s2358_s11 + $0x120] sm:$0xff]   ;;  %v2133_v16 = vld [vmem:[%s2358_s11 + $0x128] sm:$0xff]   ;;  %p2188_p13 = pnand %p2187_p12, %p2327_p4 }
  0x1b   : > { %1916 = vmatprep.subr.bf16.mxu0 %v2119_v2  ;;  %2052 = vmatprep.subr.bf16.mxu1 %v2119_v2  ;;  %v2134_v17 = vld [vmem:[%s2358_s11 + $0x30] sm:$0xff]   ;;  %v2136_v19 = vld [vmem:[%s2358_s11 + $0x38] sm:$0xff]   ;;  %v2138_v21 = vld [vmem:[%s2358_s11 + $0x40] sm:$0xff]   ;;  %p2195_p3 = por %p2194_p2, %p2193_p1 }
  0x1c   : > { %v2135_v18 = vld [vmem:[%s2358_s11 + $0x130] sm:$0xff]   ;;  %v2137_v20 = vld [vmem:[%s2358_s11 + $0x138] sm:$0xff]   ;;  %v2139_v22 = vld [vmem:[%s2358_s11 + $0x140] sm:$0xff]   ;;  %p2189_p0 = pneg %p2188_p13 }
  0x1d   : > { %v2140_v23 = vld [vmem:[%s2358_s11 + $0x48] sm:$0xff]   ;;  %v2142_v25 = vld [vmem:[%s2358_s11 + $0x50] sm:$0xff]   ;;  %v2144_v27 = vld [vmem:[%s2358_s11 + $0x58] sm:$0xff]  }
  0x1e   : > { %1917 = vmatpush3.bf16.msra.mxu0 %v2119_v2  ;;  %2057 = vmatpush3.bf16.msra.mxu1 %v2119_v2  ;;  %v2141_v24 = vld [vmem:[%s2358_s11 + $0x148] sm:$0xff]   ;;  %v2143_v26 = vld [vmem:[%s2358_s11 + $0x150] sm:$0xff]   ;;  %v2145_v28 = vld [vmem:[%s2358_s11 + $0x158] sm:$0xff]   ;;  %p2196_p5 = pnand %p2195_p3, %p2189_p0 }
  0x1f   : > { %1918 = vmatprep.subr.bf16.mxu0 %v2120_v3  ;;  %2053 = vmatprep.subr.bf16.mxu1 %v2120_v3  ;;  %v2146_v29 = vld [vmem:[%s2358_s11 + $0x60] sm:$0xff]   ;;  %v2148_v31 = vld [vmem:[%s2358_s11 + $0x68] sm:$0xff]   ;;  %v2150_v33 = vld [vmem:[%s2358_s11 + $0x70] sm:$0xff]  }
  0x20   : > { %v2147_v30 = vld [vmem:[%s2358_s11 + $0x160] sm:$0xff]   ;;  %v2149_v32 = vld [vmem:[%s2358_s11 + $0x168] sm:$0xff]   ;;  %v2151_v34 = vld [vmem:[%s2358_s11 + $0x170] sm:$0xff]  }
  0x21   : > { %v2152_v35 = vld [vmem:[%s2358_s11 + $0x78] sm:$0xff]   ;;  %v2154_v37 = vld [vmem:[%s2358_s11 + $0x80] sm:$0xff]   ;;  %v2156_v39 = vld [vmem:[%s2358_s11 + $0x88] sm:$0xff]  }
  0x22   : > { %1919 = vmatpush3.bf16.msra.mxu0 %v2120_v3  ;;  %2058 = vmatpush3.bf16.msra.mxu1 %v2120_v3  ;;  %v2153_v36 = vld [vmem:[%s2358_s11 + $0x178] sm:$0xff]   ;;  %v2155_v38 = vld [vmem:[%s2358_s11 + $0x180] sm:$0xff]   ;;  %v2157_v40 = vld [vmem:[%s2358_s11 + $0x188] sm:$0xff]  }
  0x23   : > { %1920 = vmatprep.subr.bf16.mxu0 %v2121_v6  ;;  %2054 = vmatprep.subr.bf16.mxu1 %v2121_v6  ;;  %v2158_v41 = vld [vmem:[%s2358_s11 + $0x90] sm:$0xff]   ;;  %v2160_v43 = vld [vmem:[%s2358_s11 + $0x98] sm:$0xff]   ;;  %v2162_v45 = vld [vmem:[%s2358_s11 + $0xa0] sm:$0xff]  }
  0x24   : > { %v2159_v42 = vld [vmem:[%s2358_s11 + $0x190] sm:$0xff]   ;;  %v2161_v44 = vld [vmem:[%s2358_s11 + $0x198] sm:$0xff]   ;;  %v2163_v46 = vld [vmem:[%s2358_s11 + $0x1a0] sm:$0xff]  }
  0x25   : > { %v2164_v47 = vld [vmem:[%s2358_s11 + $0xa8] sm:$0xff]   ;;  %v2166_v49 = vld [vmem:[%s2358_s11 + $0xb0] sm:$0xff]   ;;  %v2168_v51 = vld [vmem:[%s2358_s11 + $0xb8] sm:$0xff]  }
  0x26   : > { %1921 = vmatpush3.bf16.msra.mxu0 %v2121_v6  ;;  %2059 = vmatpush3.bf16.msra.mxu1 %v2121_v6  ;;  %v2165_v48 = vld [vmem:[%s2358_s11 + $0x1a8] sm:$0xff]   ;;  %v2167_v50 = vld [vmem:[%s2358_s11 + $0x1b0] sm:$0xff]   ;;  %v2169_v52 = vld [vmem:[%s2358_s11 + $0x1b8] sm:$0xff]  }
  0x27   : > { %v2170_v53 = vld [vmem:[%s2358_s11 + $0xc0] sm:$0xff]   ;;  %v2172_v55 = vld [vmem:[%s2358_s11 + $0xc8] sm:$0xff]   ;;  %v2174_v57 = vld [vmem:[%s2358_s11 + $0xd0] sm:$0xff]  }
  0x28   : > { %v2171_v54 = vld [vmem:[%s2358_s11 + $0x1c0] sm:$0xff]   ;;  %v2173_v56 = vld [vmem:[%s2358_s11 + $0x1c8] sm:$0xff]   ;;  %v2175_v58 = vld [vmem:[%s2358_s11 + $0x1d0] sm:$0xff]  }
  0x29   : > { %1923 = vmatmul.mubr.msk.bf16.vlgmr.msra.gmra.mxu0 %vm713_vm0, %v2124_v7  ;;  %1987 = vmatmul.mubr.msk.bf16.vlgmr.msra.gmra.mxu1 %vm713_vm0, %v2125_v8  ;;  %v2176_v59 = vld [vmem:[%s2358_s11 + $0xd8] sm:$0xff]   ;;  %v2178_v61 = vld [vmem:[%s2358_s11 + $0xe0] sm:$0xff]   ;;  %v2180_v63 = vld [vmem:[%s2358_s11 + $0xe8] sm:$0xff]  }
  0x2a   : > { %1926 = vmatprep.mubr.msk.bf16.mxu0 %vm713_vm0, %v2126_v9  ;;  %1990 = vmatprep.mubr.msk.bf16.mxu1 %vm713_vm0, %v2127_v10  ;;  %v2177_v60 = vld [vmem:[%s2358_s11 + $0x1d8] sm:$0xff]   ;;  %v2179_v62 = vld [vmem:[%s2358_s11 + $0x1e0] sm:$0xff]   ;;  %v2181_v0 = vld [vmem:[%s2358_s11 + $0x1e8] sm:$0xff]  }
  0x2b   : > { %v2182_v1 = vld [vmem:[%s2358_s11 + $0xf0] sm:$0xff]   ;;  %v2184_v3 = vld [vmem:[%s2358_s11 + $0xf8] sm:$0xff]   ;;  %v2497_v5 = vld [vmem:[%s2815_s2] ss:$0 sm:$0xff] }
  0x2c   : > { %v2183_v2 = vld [vmem:[%s2358_s11 + $0x1f0] sm:$0xff]   ;;  %v2185_v4 = vld [vmem:[%s2358_s11 + $0x1f8] sm:$0xff]  }
  0x31   : > { %1927 = vmatmul.mubr.msk.bf16.gmra.mxu0 %vm713_vm0, %v2128_v11  ;;  %1991 = vmatmul.mubr.msk.bf16.gmra.mxu1 %vm713_vm0, %v2129_v12 }
  0x32   : > { %1930 = vmatprep.mubr.msk.bf16.mxu0 %vm713_vm0, %v2130_v13  ;;  %1994 = vmatprep.mubr.msk.bf16.mxu1 %vm713_vm0, %v2131_v14 }
  0x39   : > { %1931 = vmatmul.mubr.msk.bf16.gmra.mxu0 %vm713_vm0, %v2132_v15  ;;  %1995 = vmatmul.mubr.msk.bf16.gmra.mxu1 %vm713_vm0, %v2133_v16 }
  0x3a   : > { %1934 = vmatprep.mubr.msk.bf16.mxu0 %vm713_vm0, %v2134_v17  ;;  %1998 = vmatprep.mubr.msk.bf16.mxu1 %vm713_vm0, %v2135_v18 }
  0x41   : > { %1935 = vmatmul.mubr.msk.bf16.gmra.mxu0 %vm713_vm0, %v2136_v19  ;;  %1999 = vmatmul.mubr.msk.bf16.gmra.mxu1 %vm713_vm0, %v2137_v20 }
  0x42   : > { %1938 = vmatprep.mubr.msk.bf16.mxu0 %vm713_vm0, %v2138_v21  ;;  %2002 = vmatprep.mubr.msk.bf16.mxu1 %vm713_vm0, %v2139_v22 }
  0x49   : > { %1939 = vmatmul.mubr.msk.bf16.gmra.mxu0 %vm713_vm0, %v2140_v23  ;;  %2003 = vmatmul.mubr.msk.bf16.gmra.mxu1 %vm713_vm0, %v2141_v24 }
  0x4a   : > { %1942 = vmatprep.mubr.msk.bf16.mxu0 %vm713_vm0, %v2142_v25  ;;  %2006 = vmatprep.mubr.msk.bf16.mxu1 %vm713_vm0, %v2143_v26 }
  0x51   : > { %1943 = vmatmul.mubr.msk.bf16.gmra.mxu0 %vm713_vm0, %v2144_v27  ;;  %2007 = vmatmul.mubr.msk.bf16.gmra.mxu1 %vm713_vm0, %v2145_v28 }
  0x52   : > { %1946 = vmatprep.mubr.msk.bf16.mxu0 %vm713_vm0, %v2146_v29  ;;  %2010 = vmatprep.mubr.msk.bf16.mxu1 %vm713_vm0, %v2147_v30 }
  0x59   : > { %1947 = vmatmul.mubr.msk.bf16.gmra.mxu0 %vm713_vm0, %v2148_v31  ;;  %2011 = vmatmul.mubr.msk.bf16.gmra.mxu1 %vm713_vm0, %v2149_v32 }
  0x5a   : > { %1950 = vmatprep.mubr.msk.bf16.mxu0 %vm713_vm0, %v2150_v33  ;;  %2014 = vmatprep.mubr.msk.bf16.mxu1 %vm713_vm0, %v2151_v34 }
  0x61   : > { %1951 = vmatmul.mubr.msk.bf16.gmra.mxu0 %vm713_vm0, %v2152_v35  ;;  %2015 = vmatmul.mubr.msk.bf16.gmra.mxu1 %vm713_vm0, %v2153_v36 }
  0x62   : > { %1954 = vmatprep.mubr.msk.bf16.mxu0 %vm713_vm0, %v2154_v37  ;;  %2018 = vmatprep.mubr.msk.bf16.mxu1 %vm713_vm0, %v2155_v38 }
  0x69   : > { %1955 = vmatmul.mubr.msk.bf16.gmra.mxu0 %vm713_vm0, %v2156_v39  ;;  %2019 = vmatmul.mubr.msk.bf16.gmra.mxu1 %vm713_vm0, %v2157_v40 }
  0x6a   : > { %1958 = vmatprep.mubr.msk.bf16.mxu0 %vm713_vm0, %v2158_v41  ;;  %2022 = vmatprep.mubr.msk.bf16.mxu1 %vm713_vm0, %v2159_v42 }
  0x71   : > { %1959 = vmatmul.mubr.msk.bf16.gmra.mxu0 %vm713_vm0, %v2160_v43  ;;  %2023 = vmatmul.mubr.msk.bf16.gmra.mxu1 %vm713_vm0, %v2161_v44 }
  0x72   : > { %1962 = vmatprep.mubr.msk.bf16.mxu0 %vm713_vm0, %v2162_v45  ;;  %2026 = vmatprep.mubr.msk.bf16.mxu1 %vm713_vm0, %v2163_v46 }
  0x79   : > { %1963 = vmatmul.mubr.msk.bf16.gmra.mxu0 %vm713_vm0, %v2164_v47  ;;  %2027 = vmatmul.mubr.msk.bf16.gmra.mxu1 %vm713_vm0, %v2165_v48 }
  0x7a   : > { %1966 = vmatprep.mubr.msk.bf16.mxu0 %vm713_vm0, %v2166_v49  ;;  %2030 = vmatprep.mubr.msk.bf16.mxu1 %vm713_vm0, %v2167_v50 }
  0x81   : > { %1967 = vmatmul.mubr.msk.bf16.gmra.mxu0 %vm713_vm0, %v2168_v51  ;;  %2031 = vmatmul.mubr.msk.bf16.gmra.mxu1 %vm713_vm0, %v2169_v52 }
  0x82   : > { %1970 = vmatprep.mubr.msk.bf16.mxu0 %vm713_vm0, %v2170_v53  ;;  %2034 = vmatprep.mubr.msk.bf16.mxu1 %vm713_vm0, %v2171_v54 }
  0x89   : > { %1971 = vmatmul.mubr.msk.bf16.gmra.mxu0 %vm713_vm0, %v2172_v55  ;;  %2035 = vmatmul.mubr.msk.bf16.gmra.mxu1 %vm713_vm0, %v2173_v56 }
  0x8a   : > { %1974 = vmatprep.mubr.msk.bf16.mxu0 %vm713_vm0, %v2174_v57  ;;  %2038 = vmatprep.mubr.msk.bf16.mxu1 %vm713_vm0, %v2175_v58 }
  0x91   : > { %1975 = vmatmul.mubr.msk.bf16.gmra.mxu0 %vm713_vm0, %v2176_v59  ;;  %2039 = vmatmul.mubr.msk.bf16.gmra.mxu1 %vm713_vm0, %v2177_v60 }
  0x92   : > { %1978 = vmatprep.mubr.msk.bf16.mxu0 %vm713_vm0, %v2178_v61  ;;  %2042 = vmatprep.mubr.msk.bf16.mxu1 %vm713_vm0, %v2179_v62 }
  0x99   : > { %1979 = vmatmul.mubr.msk.bf16.gmra.mxu0 %vm713_vm0, %v2180_v63  ;;  %2043 = vmatmul.mubr.msk.bf16.gmra.mxu1 %vm713_vm0, %v2181_v0 }
  0x9a   : > { %1982 = vmatprep.mubr.msk.bf16.mxu0 %vm713_vm0, %v2182_v1  ;;  %2046 = vmatprep.mubr.msk.bf16.mxu1 %vm713_vm0, %v2183_v2 }
  0xa1   : > { %1983 = vmatmul.mubr.msk.bf16.gmra.mxu0 %vm713_vm0, %v2184_v3  ;;  %2047 = vmatmul.mubr.msk.bf16.gmra.mxu1 %vm713_vm0, %v2185_v4 }
  0xe9   : > { %v1924_v6 = vpop.f32.mrf.mxu0  ;;  %v1988_v7 = vpop.f32.mrf.mxu1 }
  0xea   : > { %v949_v8 = vadd.f32 %v1924_v6, %v2497_v5  ;;  %v1205_v9 = vadd.f32 %v1988_v7, %v2497_v5 }
  0xeb   : > { %v940_v10 = vpop.f32.mrf.mxu0  ;;  %v1196_v11 = vpop.f32.mrf.mxu1 }
  0xec   : > { %1453 = vst [vmem:[%s2501_s28 + $0x10] sm:$0xff] %v949_v8  ;;  %1517 = vst [vmem:[%s2501_s28 + $0x210] sm:$0xff] %v1205_v9  ;;  %v941_v12 = vadd.f32 %v2497_v5, %v940_v10  ;;  %v1197_v13 = vadd.f32 %v2497_v5, %v1196_v11 }
  0xed   : > { %v1925_v14 = vpop.f32.mrf.mxu0  ;;  %v1989_v15 = vpop.f32.mrf.mxu1 }
  0xee   : > { %1451 = vst [vmem:[%s2501_s28] sm:$0xff] %v941_v12  ;;  %1515 = vst [vmem:[%s2501_s28 + $0x200] sm:$0xff] %v1197_v13  ;;  %v952_v16 = vadd.f32 %v1925_v14, %v2497_v5  ;;  %v1208_v17 = vadd.f32 %v1989_v15, %v2497_v5 }
  0xef   : > { %v943_v18 = vpop.f32.mrf.mxu0  ;;  %v1199_v19 = vpop.f32.mrf.mxu1 }
  0xf0   : > { %1454 = vst [vmem:[%s2501_s28 + $0x18] sm:$0xff] %v952_v16  ;;  %1518 = vst [vmem:[%s2501_s28 + $0x218] sm:$0xff] %v1208_v17  ;;  %v944_v20 = vadd.f32 %v2497_v5, %v943_v18  ;;  %v1200_v21 = vadd.f32 %v2497_v5, %v1199_v19 }
  0xf1   : > { %v1928_v22 = vpop.f32.mrf.mxu0  ;;  %v1992_v23 = vpop.f32.mrf.mxu1 }
  0xf2   : > { %1452 = vst [vmem:[%s2501_s28 + $0x8] sm:$0xff] %v944_v20  ;;  %1516 = vst [vmem:[%s2501_s28 + $0x208] sm:$0xff] %v1200_v21  ;;  %v965_v24 = vadd.f32 %v1928_v22, %v2497_v5  ;;  %v1221_v25 = vadd.f32 %v1992_v23, %v2497_v5 }
  0xf3   : > { %v956_v26 = vpop.f32.mrf.mxu0  ;;  %v1212_v27 = vpop.f32.mrf.mxu1 }
  0xf4   : > { %1457 = vst [vmem:[%s2501_s28 + $0x30] sm:$0xff] %v965_v24  ;;  %1521 = vst [vmem:[%s2501_s28 + $0x230] sm:$0xff] %v1221_v25  ;;  %v957_v28 = vadd.f32 %v2497_v5, %v956_v26  ;;  %v1213_v29 = vadd.f32 %v2497_v5, %v1212_v27 }
  0xf5   : > { %v1929_v30 = vpop.f32.mrf.mxu0  ;;  %v1993_v31 = vpop.f32.mrf.mxu1 }
  0xf6   : > { %1455 = vst [vmem:[%s2501_s28 + $0x20] sm:$0xff] %v957_v28  ;;  %1519 = vst [vmem:[%s2501_s28 + $0x220] sm:$0xff] %v1213_v29  ;;  %v968_v32 = vadd.f32 %v1929_v30, %v2497_v5  ;;  %v1224_v33 = vadd.f32 %v1993_v31, %v2497_v5 }
  0xf7   : > { %v959_v34 = vpop.f32.mrf.mxu0  ;;  %v1215_v35 = vpop.f32.mrf.mxu1 }
  0xf8   : > { %1458 = vst [vmem:[%s2501_s28 + $0x38] sm:$0xff] %v968_v32  ;;  %1522 = vst [vmem:[%s2501_s28 + $0x238] sm:$0xff] %v1224_v33  ;;  %v960_v36 = vadd.f32 %v2497_v5, %v959_v34  ;;  %v1216_v37 = vadd.f32 %v2497_v5, %v1215_v35 }
  0xf9   : > { %v1932_v38 = vpop.f32.mrf.mxu0  ;;  %v1996_v39 = vpop.f32.mrf.mxu1 }
  0xfa   : > { %1456 = vst [vmem:[%s2501_s28 + $0x28] sm:$0xff] %v960_v36  ;;  %1520 = vst [vmem:[%s2501_s28 + $0x228] sm:$0xff] %v1216_v37  ;;  %v981_v40 = vadd.f32 %v1932_v38, %v2497_v5  ;;  %v1237_v41 = vadd.f32 %v1996_v39, %v2497_v5 }
  0xfb   : > { %v972_v42 = vpop.f32.mrf.mxu0  ;;  %v1228_v43 = vpop.f32.mrf.mxu1 }
  0xfc   : > { %1461 = vst [vmem:[%s2501_s28 + $0x50] sm:$0xff] %v981_v40  ;;  %1525 = vst [vmem:[%s2501_s28 + $0x250] sm:$0xff] %v1237_v41  ;;  %v973_v44 = vadd.f32 %v2497_v5, %v972_v42  ;;  %v1229_v45 = vadd.f32 %v2497_v5, %v1228_v43 }
  0xfd   : > { %v1933_v46 = vpop.f32.mrf.mxu0  ;;  %v1997_v47 = vpop.f32.mrf.mxu1 }
  0xfe   : > { %1459 = vst [vmem:[%s2501_s28 + $0x40] sm:$0xff] %v973_v44  ;;  %1523 = vst [vmem:[%s2501_s28 + $0x240] sm:$0xff] %v1229_v45  ;;  %v984_v48 = vadd.f32 %v1933_v46, %v2497_v5  ;;  %v1240_v49 = vadd.f32 %v1997_v47, %v2497_v5 }
  0xff   : > { %v975_v50 = vpop.f32.mrf.mxu0  ;;  %v1231_v51 = vpop.f32.mrf.mxu1 }
 0x100   : > { %1462 = vst [vmem:[%s2501_s28 + $0x58] sm:$0xff] %v984_v48  ;;  %1526 = vst [vmem:[%s2501_s28 + $0x258] sm:$0xff] %v1240_v49  ;;  %v976_v52 = vadd.f32 %v2497_v5, %v975_v50  ;;  %v1232_v53 = vadd.f32 %v2497_v5, %v1231_v51 }
 0x101   : > { %v1936_v54 = vpop.f32.mrf.mxu0  ;;  %v2000_v55 = vpop.f32.mrf.mxu1 }
 0x102   : > { %1460 = vst [vmem:[%s2501_s28 + $0x48] sm:$0xff] %v976_v52  ;;  %1524 = vst [vmem:[%s2501_s28 + $0x248] sm:$0xff] %v1232_v53  ;;  %v997_v56 = vadd.f32 %v1936_v54, %v2497_v5  ;;  %v1253_v57 = vadd.f32 %v2000_v55, %v2497_v5 }
 0x103   : > { %v988_v58 = vpop.f32.mrf.mxu0  ;;  %v1244_v59 = vpop.f32.mrf.mxu1 }
 0x104   : > { %1465 = vst [vmem:[%s2501_s28 + $0x70] sm:$0xff] %v997_v56  ;;  %1529 = vst [vmem:[%s2501_s28 + $0x270] sm:$0xff] %v1253_v57  ;;  %v989_v60 = vadd.f32 %v2497_v5, %v988_v58  ;;  %v1245_v61 = vadd.f32 %v2497_v5, %v1244_v59 }
 0x105   : > { %v1937_v62 = vpop.f32.mrf.mxu0  ;;  %v2001_v63 = vpop.f32.mrf.mxu1 }
 0x106   : > { %1463 = vst [vmem:[%s2501_s28 + $0x60] sm:$0xff] %v989_v60  ;;  %1527 = vst [vmem:[%s2501_s28 + $0x260] sm:$0xff] %v1245_v61  ;;  %v1000_v0 = vadd.f32 %v1937_v62, %v2497_v5  ;;  %v1256_v1 = vadd.f32 %v2001_v63, %v2497_v5 }
 0x107   : > { %v991_v2 = vpop.f32.mrf.mxu0  ;;  %v1247_v3 = vpop.f32.mrf.mxu1 }
 0x108   : > { %1466 = vst [vmem:[%s2501_s28 + $0x78] sm:$0xff] %v1000_v0  ;;  %1530 = vst [vmem:[%s2501_s28 + $0x278] sm:$0xff] %v1256_v1  ;;  %v992_v4 = vadd.f32 %v2497_v5, %v991_v2  ;;  %v1248_v6 = vadd.f32 %v2497_v5, %v1247_v3 }
 0x109   : > { %v1940_v7 = vpop.f32.mrf.mxu0  ;;  %v2004_v8 = vpop.f32.mrf.mxu1 }
 0x10a   : > { %1464 = vst [vmem:[%s2501_s28 + $0x68] sm:$0xff] %v992_v4  ;;  %1528 = vst [vmem:[%s2501_s28 + $0x268] sm:$0xff] %v1248_v6  ;;  %v1013_v9 = vadd.f32 %v1940_v7, %v2497_v5  ;;  %v1269_v10 = vadd.f32 %v2004_v8, %v2497_v5 }
 0x10b   : > { %v1004_v11 = vpop.f32.mrf.mxu0  ;;  %v1260_v12 = vpop.f32.mrf.mxu1 }
 0x10c   : > { %1469 = vst [vmem:[%s2501_s28 + $0x90] sm:$0xff] %v1013_v9  ;;  %1533 = vst [vmem:[%s2501_s28 + $0x290] sm:$0xff] %v1269_v10  ;;  %v1005_v13 = vadd.f32 %v2497_v5, %v1004_v11  ;;  %v1261_v14 = vadd.f32 %v2497_v5, %v1260_v12 }
 0x10d   : > { %v1941_v15 = vpop.f32.mrf.mxu0  ;;  %v2005_v16 = vpop.f32.mrf.mxu1 }
 0x10e   : > { %1467 = vst [vmem:[%s2501_s28 + $0x80] sm:$0xff] %v1005_v13  ;;  %1531 = vst [vmem:[%s2501_s28 + $0x280] sm:$0xff] %v1261_v14  ;;  %v1016_v17 = vadd.f32 %v1941_v15, %v2497_v5  ;;  %v1272_v18 = vadd.f32 %v2005_v16, %v2497_v5 }
 0x10f   : > { %v1007_v19 = vpop.f32.mrf.mxu0  ;;  %v1263_v20 = vpop.f32.mrf.mxu1 }
 0x110   : > { %1470 = vst [vmem:[%s2501_s28 + $0x98] sm:$0xff] %v1016_v17  ;;  %1534 = vst [vmem:[%s2501_s28 + $0x298] sm:$0xff] %v1272_v18  ;;  %v1008_v21 = vadd.f32 %v2497_v5, %v1007_v19  ;;  %v1264_v22 = vadd.f32 %v2497_v5, %v1263_v20 }
 0x111   : > { %v1944_v23 = vpop.f32.mrf.mxu0  ;;  %v2008_v24 = vpop.f32.mrf.mxu1 }
 0x112   : > { %1468 = vst [vmem:[%s2501_s28 + $0x88] sm:$0xff] %v1008_v21  ;;  %1532 = vst [vmem:[%s2501_s28 + $0x288] sm:$0xff] %v1264_v22  ;;  %v1029_v25 = vadd.f32 %v1944_v23, %v2497_v5  ;;  %v1285_v26 = vadd.f32 %v2008_v24, %v2497_v5 }
 0x113   : > { %v1020_v27 = vpop.f32.mrf.mxu0  ;;  %v1276_v28 = vpop.f32.mrf.mxu1 }
 0x114   : > { %1473 = vst [vmem:[%s2501_s28 + $0xb0] sm:$0xff] %v1029_v25  ;;  %1537 = vst [vmem:[%s2501_s28 + $0x2b0] sm:$0xff] %v1285_v26  ;;  %v1021_v29 = vadd.f32 %v2497_v5, %v1020_v27  ;;  %v1277_v30 = vadd.f32 %v2497_v5, %v1276_v28 }
 0x115   : > { %v1945_v31 = vpop.f32.mrf.mxu0  ;;  %v2009_v32 = vpop.f32.mrf.mxu1 }
 0x116   : > { %1471 = vst [vmem:[%s2501_s28 + $0xa0] sm:$0xff] %v1021_v29  ;;  %1535 = vst [vmem:[%s2501_s28 + $0x2a0] sm:$0xff] %v1277_v30  ;;  %v1032_v33 = vadd.f32 %v1945_v31, %v2497_v5  ;;  %v1288_v34 = vadd.f32 %v2009_v32, %v2497_v5 }
 0x117   : > { %v1023_v35 = vpop.f32.mrf.mxu0  ;;  %v1279_v36 = vpop.f32.mrf.mxu1 }
 0x118   : > { %1474 = vst [vmem:[%s2501_s28 + $0xb8] sm:$0xff] %v1032_v33  ;;  %1538 = vst [vmem:[%s2501_s28 + $0x2b8] sm:$0xff] %v1288_v34  ;;  %v1024_v37 = vadd.f32 %v2497_v5, %v1023_v35  ;;  %v1280_v38 = vadd.f32 %v2497_v5, %v1279_v36 }
 0x119   : > { %v1948_v39 = vpop.f32.mrf.mxu0  ;;  %v2012_v40 = vpop.f32.mrf.mxu1 }
 0x11a   : > { %1472 = vst [vmem:[%s2501_s28 + $0xa8] sm:$0xff] %v1024_v37  ;;  %1536 = vst [vmem:[%s2501_s28 + $0x2a8] sm:$0xff] %v1280_v38  ;;  %v1045_v41 = vadd.f32 %v1948_v39, %v2497_v5  ;;  %v1301_v42 = vadd.f32 %v2012_v40, %v2497_v5 }
 0x11b   : > { %v1036_v43 = vpop.f32.mrf.mxu0  ;;  %v1292_v44 = vpop.f32.mrf.mxu1 }
 0x11c   : > { %1477 = vst [vmem:[%s2501_s28 + $0xd0] sm:$0xff] %v1045_v41  ;;  %1541 = vst [vmem:[%s2501_s28 + $0x2d0] sm:$0xff] %v1301_v42  ;;  %v1037_v45 = vadd.f32 %v2497_v5, %v1036_v43  ;;  %v1293_v46 = vadd.f32 %v2497_v5, %v1292_v44 }
 0x11d   : > { %v1949_v47 = vpop.f32.mrf.mxu0  ;;  %v2013_v48 = vpop.f32.mrf.mxu1 }
 0x11e   : > { %1475 = vst [vmem:[%s2501_s28 + $0xc0] sm:$0xff] %v1037_v45  ;;  %1539 = vst [vmem:[%s2501_s28 + $0x2c0] sm:$0xff] %v1293_v46  ;;  %v1048_v49 = vadd.f32 %v1949_v47, %v2497_v5  ;;  %v1304_v50 = vadd.f32 %v2013_v48, %v2497_v5 }
 0x11f   : > { %v1039_v51 = vpop.f32.mrf.mxu0  ;;  %v1295_v52 = vpop.f32.mrf.mxu1 }
 0x120   : > { %1478 = vst [vmem:[%s2501_s28 + $0xd8] sm:$0xff] %v1048_v49  ;;  %1542 = vst [vmem:[%s2501_s28 + $0x2d8] sm:$0xff] %v1304_v50  ;;  %v1040_v53 = vadd.f32 %v2497_v5, %v1039_v51  ;;  %v1296_v54 = vadd.f32 %v2497_v5, %v1295_v52 }
 0x121   : > { %v1952_v55 = vpop.f32.mrf.mxu0  ;;  %v2016_v56 = vpop.f32.mrf.mxu1 }
 0x122   : > { %1476 = vst [vmem:[%s2501_s28 + $0xc8] sm:$0xff] %v1040_v53  ;;  %1540 = vst [vmem:[%s2501_s28 + $0x2c8] sm:$0xff] %v1296_v54  ;;  %v1061_v57 = vadd.f32 %v1952_v55, %v2497_v5  ;;  %v1317_v58 = vadd.f32 %v2016_v56, %v2497_v5 }
 0x123   : > { %v1052_v59 = vpop.f32.mrf.mxu0  ;;  %v1308_v60 = vpop.f32.mrf.mxu1 }
 0x124   : > { %1481 = vst [vmem:[%s2501_s28 + $0xf0] sm:$0xff] %v1061_v57  ;;  %1545 = vst [vmem:[%s2501_s28 + $0x2f0] sm:$0xff] %v1317_v58  ;;  %v1053_v61 = vadd.f32 %v2497_v5, %v1052_v59  ;;  %v1309_v62 = vadd.f32 %v2497_v5, %v1308_v60 }
 0x125   : > { %v1953_v63 = vpop.f32.mrf.mxu0  ;;  %v2017_v0 = vpop.f32.mrf.mxu1 }
 0x126   : > { %1479 = vst [vmem:[%s2501_s28 + $0xe0] sm:$0xff] %v1053_v61  ;;  %1543 = vst [vmem:[%s2501_s28 + $0x2e0] sm:$0xff] %v1309_v62  ;;  %v1064_v1 = vadd.f32 %v1953_v63, %v2497_v5  ;;  %v1320_v2 = vadd.f32 %v2017_v0, %v2497_v5 }
 0x127   : > { %v1055_v3 = vpop.f32.mrf.mxu0  ;;  %v1311_v4 = vpop.f32.mrf.mxu1 }
 0x128   : > { %1482 = vst [vmem:[%s2501_s28 + $0xf8] sm:$0xff] %v1064_v1  ;;  %1546 = vst [vmem:[%s2501_s28 + $0x2f8] sm:$0xff] %v1320_v2  ;;  %v1056_v6 = vadd.f32 %v2497_v5, %v1055_v3  ;;  %v1312_v7 = vadd.f32 %v2497_v5, %v1311_v4 }
 0x129   : > { %v1956_v8 = vpop.f32.mrf.mxu0  ;;  %v2020_v9 = vpop.f32.mrf.mxu1 }
 0x12a   : > { %1480 = vst [vmem:[%s2501_s28 + $0xe8] sm:$0xff] %v1056_v6  ;;  %1544 = vst [vmem:[%s2501_s28 + $0x2e8] sm:$0xff] %v1312_v7  ;;  %v1077_v10 = vadd.f32 %v1956_v8, %v2497_v5  ;;  %v1333_v11 = vadd.f32 %v2020_v9, %v2497_v5 }
 0x12b   : > { %v1068_v12 = vpop.f32.mrf.mxu0  ;;  %v1324_v13 = vpop.f32.mrf.mxu1 }
 0x12c   : > { %1485 = vst [vmem:[%s2501_s28 + $0x110] sm:$0xff] %v1077_v10  ;;  %1549 = vst [vmem:[%s2501_s28 + $0x310] sm:$0xff] %v1333_v11  ;;  %v1069_v14 = vadd.f32 %v2497_v5, %v1068_v12  ;;  %v1325_v15 = vadd.f32 %v2497_v5, %v1324_v13 }
 0x12d   : > { %v1957_v16 = vpop.f32.mrf.mxu0  ;;  %v2021_v17 = vpop.f32.mrf.mxu1 }
 0x12e   : > { %1483 = vst [vmem:[%s2501_s28 + $0x100] sm:$0xff] %v1069_v14  ;;  %1547 = vst [vmem:[%s2501_s28 + $0x300] sm:$0xff] %v1325_v15  ;;  %v1080_v18 = vadd.f32 %v1957_v16, %v2497_v5  ;;  %v1336_v19 = vadd.f32 %v2021_v17, %v2497_v5 }
 0x12f   : > { %v1071_v20 = vpop.f32.mrf.mxu0  ;;  %v1327_v21 = vpop.f32.mrf.mxu1 }
 0x130   : > { %1486 = vst [vmem:[%s2501_s28 + $0x118] sm:$0xff] %v1080_v18  ;;  %1550 = vst [vmem:[%s2501_s28 + $0x318] sm:$0xff] %v1336_v19  ;;  %v1072_v22 = vadd.f32 %v2497_v5, %v1071_v20  ;;  %v1328_v23 = vadd.f32 %v2497_v5, %v1327_v21 }
 0x131   : > { %v1960_v24 = vpop.f32.mrf.mxu0  ;;  %v2024_v25 = vpop.f32.mrf.mxu1 }
 0x132   : > { %1484 = vst [vmem:[%s2501_s28 + $0x108] sm:$0xff] %v1072_v22  ;;  %1548 = vst [vmem:[%s2501_s28 + $0x308] sm:$0xff] %v1328_v23  ;;  %v1093_v26 = vadd.f32 %v1960_v24, %v2497_v5  ;;  %v1349_v27 = vadd.f32 %v2024_v25, %v2497_v5 }
 0x133   : > { %v1084_v28 = vpop.f32.mrf.mxu0  ;;  %v1340_v29 = vpop.f32.mrf.mxu1 }
 0x134   : > { %1489 = vst [vmem:[%s2501_s28 + $0x130] sm:$0xff] %v1093_v26  ;;  %1553 = vst [vmem:[%s2501_s28 + $0x330] sm:$0xff] %v1349_v27  ;;  %v1085_v30 = vadd.f32 %v2497_v5, %v1084_v28  ;;  %v1341_v31 = vadd.f32 %v2497_v5, %v1340_v29 }
 0x135   : > { %v1961_v32 = vpop.f32.mrf.mxu0  ;;  %v2025_v33 = vpop.f32.mrf.mxu1 }
 0x136   : > { %1487 = vst [vmem:[%s2501_s28 + $0x120] sm:$0xff] %v1085_v30  ;;  %1551 = vst [vmem:[%s2501_s28 + $0x320] sm:$0xff] %v1341_v31  ;;  %v1096_v34 = vadd.f32 %v1961_v32, %v2497_v5  ;;  %v1352_v35 = vadd.f32 %v2025_v33, %v2497_v5 }
 0x137   : > { %v1087_v36 = vpop.f32.mrf.mxu0  ;;  %v1343_v37 = vpop.f32.mrf.mxu1 }
 0x138   : > { %1490 = vst [vmem:[%s2501_s28 + $0x138] sm:$0xff] %v1096_v34  ;;  %1554 = vst [vmem:[%s2501_s28 + $0x338] sm:$0xff] %v1352_v35  ;;  %v1088_v38 = vadd.f32 %v2497_v5, %v1087_v36  ;;  %v1344_v39 = vadd.f32 %v2497_v5, %v1343_v37 }
 0x139   : > { %v1964_v40 = vpop.f32.mrf.mxu0  ;;  %v2028_v41 = vpop.f32.mrf.mxu1 }
 0x13a   : > { %1488 = vst [vmem:[%s2501_s28 + $0x128] sm:$0xff] %v1088_v38  ;;  %1552 = vst [vmem:[%s2501_s28 + $0x328] sm:$0xff] %v1344_v39  ;;  %v1109_v42 = vadd.f32 %v1964_v40, %v2497_v5  ;;  %v1365_v43 = vadd.f32 %v2028_v41, %v2497_v5 }
 0x13b   : > { %v1100_v44 = vpop.f32.mrf.mxu0  ;;  %v1356_v45 = vpop.f32.mrf.mxu1 }
 0x13c   : > { %1493 = vst [vmem:[%s2501_s28 + $0x150] sm:$0xff] %v1109_v42  ;;  %1557 = vst [vmem:[%s2501_s28 + $0x350] sm:$0xff] %v1365_v43  ;;  %v1101_v46 = vadd.f32 %v2497_v5, %v1100_v44  ;;  %v1357_v47 = vadd.f32 %v2497_v5, %v1356_v45 }
 0x13d   : > { %v1965_v48 = vpop.f32.mrf.mxu0  ;;  %v2029_v49 = vpop.f32.mrf.mxu1 }
 0x13e   : > { %1491 = vst [vmem:[%s2501_s28 + $0x140] sm:$0xff] %v1101_v46  ;;  %1555 = vst [vmem:[%s2501_s28 + $0x340] sm:$0xff] %v1357_v47  ;;  %v1112_v50 = vadd.f32 %v1965_v48, %v2497_v5  ;;  %v1368_v51 = vadd.f32 %v2029_v49, %v2497_v5 }
 0x13f   : > { %v1103_v52 = vpop.f32.mrf.mxu0  ;;  %v1359_v53 = vpop.f32.mrf.mxu1 }
 0x140   : > { %1494 = vst [vmem:[%s2501_s28 + $0x158] sm:$0xff] %v1112_v50  ;;  %1558 = vst [vmem:[%s2501_s28 + $0x358] sm:$0xff] %v1368_v51  ;;  %v1104_v54 = vadd.f32 %v2497_v5, %v1103_v52  ;;  %v1360_v55 = vadd.f32 %v2497_v5, %v1359_v53 }
 0x141   : > { %v1968_v56 = vpop.f32.mrf.mxu0  ;;  %v2032_v57 = vpop.f32.mrf.mxu1 }
 0x142   : > { %1492 = vst [vmem:[%s2501_s28 + $0x148] sm:$0xff] %v1104_v54  ;;  %1556 = vst [vmem:[%s2501_s28 + $0x348] sm:$0xff] %v1360_v55  ;;  %v1125_v58 = vadd.f32 %v1968_v56, %v2497_v5  ;;  %v1381_v59 = vadd.f32 %v2032_v57, %v2497_v5 }
 0x143   : > { %v1116_v60 = vpop.f32.mrf.mxu0  ;;  %v1372_v61 = vpop.f32.mrf.mxu1 }
 0x144   : > { %1497 = vst [vmem:[%s2501_s28 + $0x170] sm:$0xff] %v1125_v58  ;;  %1561 = vst [vmem:[%s2501_s28 + $0x370] sm:$0xff] %v1381_v59  ;;  %v1117_v62 = vadd.f32 %v2497_v5, %v1116_v60  ;;  %v1373_v63 = vadd.f32 %v2497_v5, %v1372_v61 }
 0x145   : > { %v1969_v0 = vpop.f32.mrf.mxu0  ;;  %v2033_v1 = vpop.f32.mrf.mxu1 }
 0x146   : > { %1495 = vst [vmem:[%s2501_s28 + $0x160] sm:$0xff] %v1117_v62  ;;  %1559 = vst [vmem:[%s2501_s28 + $0x360] sm:$0xff] %v1373_v63  ;;  %v1128_v2 = vadd.f32 %v1969_v0, %v2497_v5  ;;  %v1384_v3 = vadd.f32 %v2033_v1, %v2497_v5 }
 0x147   : > { %v1119_v4 = vpop.f32.mrf.mxu0  ;;  %v1375_v6 = vpop.f32.mrf.mxu1 }
 0x148   : > { %1498 = vst [vmem:[%s2501_s28 + $0x178] sm:$0xff] %v1128_v2  ;;  %1562 = vst [vmem:[%s2501_s28 + $0x378] sm:$0xff] %v1384_v3  ;;  %v1120_v7 = vadd.f32 %v2497_v5, %v1119_v4  ;;  %v1376_v8 = vadd.f32 %v2497_v5, %v1375_v6 }
 0x149   : > { %v1972_v9 = vpop.f32.mrf.mxu0  ;;  %v2036_v10 = vpop.f32.mrf.mxu1 }
 0x14a   : > { %1496 = vst [vmem:[%s2501_s28 + $0x168] sm:$0xff] %v1120_v7  ;;  %1560 = vst [vmem:[%s2501_s28 + $0x368] sm:$0xff] %v1376_v8  ;;  %v1141_v11 = vadd.f32 %v1972_v9, %v2497_v5  ;;  %v1397_v12 = vadd.f32 %v2036_v10, %v2497_v5 }
 0x14b   : > { %v1132_v13 = vpop.f32.mrf.mxu0  ;;  %v1388_v14 = vpop.f32.mrf.mxu1 }
 0x14c   : > { %1501 = vst [vmem:[%s2501_s28 + $0x190] sm:$0xff] %v1141_v11  ;;  %1565 = vst [vmem:[%s2501_s28 + $0x390] sm:$0xff] %v1397_v12  ;;  %v1133_v15 = vadd.f32 %v2497_v5, %v1132_v13  ;;  %v1389_v16 = vadd.f32 %v2497_v5, %v1388_v14 }
 0x14d   : > { %v1973_v17 = vpop.f32.mrf.mxu0  ;;  %v2037_v18 = vpop.f32.mrf.mxu1 }
 0x14e   : > { %1499 = vst [vmem:[%s2501_s28 + $0x180] sm:$0xff] %v1133_v15  ;;  %1563 = vst [vmem:[%s2501_s28 + $0x380] sm:$0xff] %v1389_v16  ;;  %v1144_v19 = vadd.f32 %v1973_v17, %v2497_v5  ;;  %v1400_v20 = vadd.f32 %v2037_v18, %v2497_v5 }
 0x14f   : > { %v1135_v21 = vpop.f32.mrf.mxu0  ;;  %v1391_v22 = vpop.f32.mrf.mxu1 }
 0x150   : > { %1502 = vst [vmem:[%s2501_s28 + $0x198] sm:$0xff] %v1144_v19  ;;  %1566 = vst [vmem:[%s2501_s28 + $0x398] sm:$0xff] %v1400_v20  ;;  %v1136_v23 = vadd.f32 %v2497_v5, %v1135_v21  ;;  %v1392_v24 = vadd.f32 %v2497_v5, %v1391_v22 }
 0x151   : > { %v1976_v25 = vpop.f32.mrf.mxu0  ;;  %v2040_v26 = vpop.f32.mrf.mxu1 }
 0x152   : > { %1500 = vst [vmem:[%s2501_s28 + $0x188] sm:$0xff] %v1136_v23  ;;  %1564 = vst [vmem:[%s2501_s28 + $0x388] sm:$0xff] %v1392_v24  ;;  %v1157_v27 = vadd.f32 %v1976_v25, %v2497_v5  ;;  %v1413_v28 = vadd.f32 %v2040_v26, %v2497_v5 }
 0x153   : > { %v1148_v29 = vpop.f32.mrf.mxu0  ;;  %v1404_v30 = vpop.f32.mrf.mxu1 }
 0x154   : > { %1505 = vst [vmem:[%s2501_s28 + $0x1b0] sm:$0xff] %v1157_v27  ;;  %1569 = vst [vmem:[%s2501_s28 + $0x3b0] sm:$0xff] %v1413_v28  ;;  %v1149_v31 = vadd.f32 %v2497_v5, %v1148_v29  ;;  %v1405_v32 = vadd.f32 %v2497_v5, %v1404_v30 }
 0x155   : > { %v1977_v33 = vpop.f32.mrf.mxu0  ;;  %v2041_v34 = vpop.f32.mrf.mxu1 }
 0x156   : > { %1503 = vst [vmem:[%s2501_s28 + $0x1a0] sm:$0xff] %v1149_v31  ;;  %1567 = vst [vmem:[%s2501_s28 + $0x3a0] sm:$0xff] %v1405_v32  ;;  %v1160_v35 = vadd.f32 %v1977_v33, %v2497_v5  ;;  %v1416_v36 = vadd.f32 %v2041_v34, %v2497_v5 }
 0x157   : > { %v1151_v37 = vpop.f32.mrf.mxu0  ;;  %v1407_v38 = vpop.f32.mrf.mxu1 }
 0x158   : > { %1506 = vst [vmem:[%s2501_s28 + $0x1b8] sm:$0xff] %v1160_v35  ;;  %1570 = vst [vmem:[%s2501_s28 + $0x3b8] sm:$0xff] %v1416_v36  ;;  %v1152_v39 = vadd.f32 %v2497_v5, %v1151_v37  ;;  %v1408_v40 = vadd.f32 %v2497_v5, %v1407_v38 }
 0x159   : > { %v1980_v41 = vpop.f32.mrf.mxu0  ;;  %v2044_v42 = vpop.f32.mrf.mxu1 }
 0x15a   : > { %1504 = vst [vmem:[%s2501_s28 + $0x1a8] sm:$0xff] %v1152_v39  ;;  %1568 = vst [vmem:[%s2501_s28 + $0x3a8] sm:$0xff] %v1408_v40  ;;  %v1173_v43 = vadd.f32 %v1980_v41, %v2497_v5  ;;  %v1429_v44 = vadd.f32 %v2044_v42, %v2497_v5 }
 0x15b   : > { %v1164_v45 = vpop.f32.mrf.mxu0  ;;  %v1420_v46 = vpop.f32.mrf.mxu1 }
 0x15c   : > { %1509 = vst [vmem:[%s2501_s28 + $0x1d0] sm:$0xff] %v1173_v43  ;;  %1573 = vst [vmem:[%s2501_s28 + $0x3d0] sm:$0xff] %v1429_v44  ;;  %v1165_v47 = vadd.f32 %v2497_v5, %v1164_v45  ;;  %v1421_v48 = vadd.f32 %v2497_v5, %v1420_v46 }
 0x15d   : > { %v1981_v49 = vpop.f32.mrf.mxu0  ;;  %v2045_v50 = vpop.f32.mrf.mxu1 }
 0x15e   : > { %1507 = vst [vmem:[%s2501_s28 + $0x1c0] sm:$0xff] %v1165_v47  ;;  %1571 = vst [vmem:[%s2501_s28 + $0x3c0] sm:$0xff] %v1421_v48  ;;  %v1176_v51 = vadd.f32 %v1981_v49, %v2497_v5  ;;  %v1432_v52 = vadd.f32 %v2045_v50, %v2497_v5 }
 0x15f   : > { %v1167_v53 = vpop.f32.mrf.mxu0  ;;  %v1423_v54 = vpop.f32.mrf.mxu1 }
 0x160   : > { %1510 = vst [vmem:[%s2501_s28 + $0x1d8] sm:$0xff] %v1176_v51  ;;  %1574 = vst [vmem:[%s2501_s28 + $0x3d8] sm:$0xff] %v1432_v52  ;;  %v1168_v55 = vadd.f32 %v2497_v5, %v1167_v53  ;;  %v1424_v56 = vadd.f32 %v2497_v5, %v1423_v54 }
 0x161   : > { %v1984_v57 = vpop.f32.mrf.mxu0  ;;  %v2048_v58 = vpop.f32.mrf.mxu1 }
 0x162   : > { %1508 = vst [vmem:[%s2501_s28 + $0x1c8] sm:$0xff] %v1168_v55  ;;  %1572 = vst [vmem:[%s2501_s28 + $0x3c8] sm:$0xff] %v1424_v56  ;;  %v1189_v59 = vadd.f32 %v1984_v57, %v2497_v5  ;;  %v1445_v60 = vadd.f32 %v2048_v58, %v2497_v5 }
 0x163   : > { %v1180_v61 = vpop.f32.mrf.mxu0  ;;  %v1436_v62 = vpop.f32.mrf.mxu1 }
 0x164   : > { %1513 = vst [vmem:[%s2501_s28 + $0x1f0] sm:$0xff] %v1189_v59  ;;  %1577 = vst [vmem:[%s2501_s28 + $0x3f0] sm:$0xff] %v1445_v60  ;;  %v1181_v63 = vadd.f32 %v2497_v5, %v1180_v61  ;;  %v1437_v0 = vadd.f32 %v2497_v5, %v1436_v62 }
 0x165   : > { %v1985_v1 = vpop.f32.mrf.mxu0  ;;  %v2049_v2 = vpop.f32.mrf.mxu1 }
 0x166   : > { %1511 = vst [vmem:[%s2501_s28 + $0x1e0] sm:$0xff] %v1181_v63  ;;  %1575 = vst [vmem:[%s2501_s28 + $0x3e0] sm:$0xff] %v1437_v0  ;;  %v1192_v3 = vadd.f32 %v1985_v1, %v2497_v5  ;;  %v1448_v4 = vadd.f32 %v2049_v2, %v2497_v5 }
 0x167   : > { %v1183_v6 = vpop.f32.mrf.mxu0  ;;  %v1439_v7 = vpop.f32.mrf.mxu1 }
 0x168   : > { %1514 = vst [vmem:[%s2501_s28 + $0x1f8] sm:$0xff] %v1192_v3  ;;  %1578 = vst [vmem:[%s2501_s28 + $0x3f8] sm:$0xff] %v1448_v4  ;;  %v1184_v8 = vadd.f32 %v2497_v5, %v1183_v6  ;;  %v1440_v9 = vadd.f32 %v2497_v5, %v1439_v7 }
 0x16a   : > { %1512 = vst [vmem:[%s2501_s28 + $0x1e8] sm:$0xff] %v1184_v8  ;;  %1576 = vst [vmem:[%s2501_s28 + $0x3e8] sm:$0xff] %v1440_v9 }
 0x16b   : > { %2199 = shalt.err (!%p2196_p5)
}
 0x16c   : > { %s2200_s11 = scalar_lea.hbm %s2756_s6, 16384  ;;  %s2204_s21 = scalar_lea.hbm %s2816_s3, 131072 }
 0x16d   : > { %p2201_p6 = scmp.ne.s32.totalorder %s2756_s6, %s2200_s11  ;;  %p2205_p10 = scmp.lt.s32.totalorder %s2756_s6, %s2816_s3 }
 0x16e   : > { %p2206_p11 = scmp.lt.s32.totalorder %s2204_s21, %s2200_s11 }
 0x16f   : > { %p2202_p7 = pnand %p2201_p6, %p2327_p4 }
 0x170   : > { %p2207_p12 = por %p2206_p11, %p2205_p10 }
 0x171   : > { %p2203_p9 = pneg %p2202_p7 }
 0x173   : > { %p2208_p13 = pnand %p2207_p12, %p2203_p9 }
 0x175   : > { %2211 = shalt.err (!%p2208_p13)
}
 0x176   : > { %s2265_s27 = smov 128   ;;  %s2266_s28 = smov 8  }
 0x177   : > { %2060 = dma.vmem_to_hbm [thread:$0]  (%p2327_p4), %s2758_s30, 16384, %s2756_s6, %s2768_s15, %s2265_s27, %s2265_s27, %s2266_s28  }
 0x178 PF: > { %p2066_p0 = scmp.ge.s32.totalorder %s2262_s17, 2  ;;  %s1609_s29 = sand.u32 1, %s2242_s12  }
 0x179   : > { %s1610_s4 = scalar_lea.sflag [#allocation3], %s1609_s29 }
 0x17a   : > { %p2063_p1 = pnand %p2066_p0, %p2334_p8 }
 0x17c   : > { %p2064_p2 = pneg %p2063_p1 }
 0x17e   : > { %2237 = dma.done.wait (%p2064_p2), %s1610_s4, 16384  }
 0x17f   : > { %2239 = vsyncadd (%p2064_p2), %s1610_s4, 4294950912  ;;  %s16_s17 = sadd.s32 1, %s2262_s17   ;;  %s2819_s12 = smov %s2246_s13 }
 0x180   : > { %p13_p3 = scmp.ge.s32.totalorder %s16_s17, 10   ;;  %s2820_s13 = smov %s2250_s14 }
 0x181   : > { %s2821_s14 = smov %s2340_s25  ;;  %s2822_s15 = smov %s2258_s16 }
 0x182   : > { %s2823_s16 = smov %s2825_s20  ;;  %15 = sbr.rel (!%p13_p3) target bundleno = 4 (0x4), region = 73 }
 0x187   :  { %1615 = vsyncpa [#allocation3], 1 }
 0x188   :  { %1617 = vsyncpa [#allocation3 + $0x1], 1 }

</bundles_post_ra>
